<compile_context>
chip_gen: v6e
topology: v6e:2x2x1
jax: 0.10.0
libtpu: 0.0.40
codegen_flags: <defaults>
</compile_context>

<pallas_src>
import functools

import jax
import jax.numpy as jnp
from jax.experimental import pallas as pl
from jax.experimental.pallas import tpu as pltpu


# ----------------------------------------------------------------------------
# Fused Conv1d + BN(scale/shift) + ReLU kernel
# ----------------------------------------------------------------------------
def _conv1d_bn_relu_kernel(x_ref, w_ref, scale_ref, bias_ref, o_ref, *,
                           ksize, stride, l_out, cin, batch_tile):
    """One batch tile of Conv1d(bias=False) + BatchNorm + ReLU.

    x_ref:     (batch_tile, S, stride*cin)   bf16, S = l_out + (ksize-1)//stride
               element [n, s, r*cin + c] == x[sample n, channel c, pos s*stride+r]
    w_ref:     (ksize*cin, Cout_pad)         bf16, row t*cin + c == conv_w[:, c, t]
    scale_ref: (1, Cout_pad)                 f32 BN scale  gamma/sqrt(var+eps)
    bias_ref:  (1, Cout_pad)                 f32 BN shift  beta - mean*scale
    o_ref:     (batch_tile, l_out, Cout_pad) f32
    """
    x = x_ref[...]                                     # (bt, S, stride*cin)
    w = w_ref[...]                                     # (k*cin, Cout_pad)
    cout_p = o_ref.shape[-1]
    m = batch_tile * l_out

    acc = jnp.zeros((m, cout_p), jnp.float32)
    for t in range(ksize):                             # static, tiny unroll
        q, r = divmod(t, stride)
        tap = x[:, q:q + l_out, r * cin:(r + 1) * cin]         # (bt, l_out, cin)
        tap = tap.reshape(m, cin)                              # fold batch into M
        acc = acc + jnp.dot(tap, w[t * cin:(t + 1) * cin, :],
                            preferred_element_type=jnp.float32)

    y = jnp.maximum(acc * scale_ref[...] + bias_ref[...], 0.0)
    o_ref[...] = y.reshape(batch_tile, l_out, cout_p).astype(o_ref.dtype)


# ----------------------------------------------------------------------------
# Wrapper: layout prep + pallas_call
# ----------------------------------------------------------------------------
def basic_conv1d(x, conv_w, bn_gamma, bn_beta, bn_mean, bn_var, *,
                 stride=2, eps=1e-3, target_m=256, lane=128,
                 vmem_budget_bytes=8 * 1024 * 1024):
    """x: (N, Cin, L) PyTorch layout.  Returns (N, Cout, Lout) float32."""
    N, Cin, L = x.shape
    Cout, Cin_w, ksize = conv_w.shape
    assert Cin_w == Cin
    l_out = (L - ksize) // stride + 1
    assert l_out >= 1

    q_max = (ksize - 1) // stride
    S = l_out + q_max                 # per-sample rows after the stride-fold
    L_use = stride * S                # covers every tap index we ever read
    Cout_pad = -(-Cout // lane) * lane

    # batch_tile: M = batch_tile*l_out ~ target_m, under a conservative
    # per-step VMEM budget (double-buffered bf16 input + f32 output blocks).
    bytes_per_sample = 2 * (S * stride * Cin * 2) + 2 * (l_out * Cout_pad * 4)
    bt_vmem = max(1, vmem_budget_bytes // max(bytes_per_sample, 1))
    batch_tile = max(1, min(N, max(1, target_m // l_out), bt_vmem))
    grid_n = -(-N // batch_tile)      # internal batch padding handles remainders
    N_pad = grid_n * batch_tile

    # ---- host-side layout prep (no k-fold im2col inflation) ----------------
    # TODO(synk): for a channels-last pipeline these two transposes (input and
    # output) disappear; kept here to honor the module's NCL interface.
    x_nlc = jnp.transpose(x, (0, 2, 1))                        # (N, L, Cin)
    if L_use > L:
        x_nlc = jnp.pad(x_nlc, ((0, 0), (0, L_use - L), (0, 0)))
    else:
        x_nlc = x_nlc[:, :L_use, :]
    if N_pad > N:
        x_nlc = jnp.pad(x_nlc, ((0, N_pad - N), (0, 0), (0, 0)))
    x_fold = x_nlc.reshape(N_pad, S, stride * Cin).astype(jnp.bfloat16)

    # (Cout, Cin, k) -> (k*Cin, Cout_pad); row index t*Cin + c matches the
    # tap-major slicing done inside the kernel.
    w_mat = jnp.transpose(conv_w, (2, 1, 0)).reshape(ksize * Cin, Cout)
    w_mat = jnp.pad(w_mat, ((0, 0), (0, Cout_pad - Cout))).astype(jnp.bfloat16)

    scale = (bn_gamma / jnp.sqrt(bn_var + eps)).astype(jnp.float32)
    shift = (bn_beta - bn_mean * scale).astype(jnp.float32)
    scale_p = jnp.pad(scale, (0, Cout_pad - Cout)).reshape(1, Cout_pad)
    shift_p = jnp.pad(shift, (0, Cout_pad - Cout)).reshape(1, Cout_pad)

    kernel = functools.partial(
        _conv1d_bn_relu_kernel, ksize=ksize, stride=stride, l_out=l_out,
        cin=Cin, batch_tile=batch_tile)

    out = pl.pallas_call(
        kernel,
        out_shape=jax.ShapeDtypeStruct((N_pad, l_out, Cout_pad), jnp.float32),
        grid=(grid_n,),
        in_specs=[
            pl.BlockSpec((batch_tile, S, stride * Cin), lambda b: (b, 0, 0)),
            pl.BlockSpec((ksize * Cin, Cout_pad), lambda b: (0, 0)),
            pl.BlockSpec((1, Cout_pad), lambda b: (0, 0)),
            pl.BlockSpec((1, Cout_pad), lambda b: (0, 0)),
        ],
        out_specs=pl.BlockSpec((batch_tile, l_out, Cout_pad),
                               lambda b: (b, 0, 0)),
        compiler_params=pltpu.CompilerParams(
            dimension_semantics=("parallel",)),   # v7x: 2 TCs split the batch
    )(x_fold, w_mat, scale_p, shift_p)

    out = out[:N, :, :Cout]                        # drop batch / lane padding
    return jnp.transpose(out, (0, 2, 1))           # back to (N, Cout, Lout)


# ----------------------------------------------------------------------------
# Pure-JAX reference (direct Conv1d math) for a silent correctness check
# ----------------------------------------------------------------------------
def reference_forward(x, conv_w, bn_gamma, bn_beta, bn_mean, bn_var, *,
                      stride=2, eps=1e-3, matmul_dtype=jnp.float32):
    N, Cin, L = x.shape
    Cout, _, ksize = conv_w.shape
    l_out = (L - ksize) // stride + 1
    scale = bn_gamma / jnp.sqrt(bn_var + eps)
    bias = bn_beta - bn_mean * scale
    xm = x.astype(matmul_dtype)
    wm = conv_w.astype(matmul_dtype)
    y = jnp.zeros((N, Cout, l_out), jnp.float32)
    for t in range(ksize):
        tap = xm[:, :, t: t + stride * (l_out - 1) + 1: stride]   # (N, Cin, Lout)
        y = y + jnp.einsum("ncl,oc->nol", tap, wm[:, :, t],
                           preferred_element_type=jnp.float32)
    return jnp.maximum(y * scale[None, :, None] + bias[None, :, None], 0.0)


if __name__ == "__main__":
    key = jax.random.PRNGKey(0)
    k_x, k_w, k_g, k_b, k_m, k_v = jax.random.split(key, 6)

    # Small shapes consistent with Conv1d(4 -> 32, kernel_size=3, stride=2).
    N, Cin, L = 2, 4, 16
    Cout, ksize, stride = 32, 3, 2

    x = jax.random.normal(k_x, (N, Cin, L), jnp.float32)
    conv_w = 0.1 * jax.random.normal(k_w, (Cout, Cin, ksize), jnp.float32)
    bn_gamma = 1.0 + 0.1 * jax.random.normal(k_g, (Cout,), jnp.float32)
    bn_beta = 0.1 * jax.random.normal(k_b, (Cout,), jnp.float32)
    bn_mean = 0.1 * jax.random.normal(k_m, (Cout,), jnp.float32)
    bn_var = 1.0 + 0.1 * jnp.abs(jax.random.normal(k_v, (Cout,), jnp.float32))

    out = basic_conv1d(x, conv_w, bn_gamma, bn_beta, bn_mean, bn_var,
                       stride=stride, eps=0.001)
    out = jax.block_until_ready(out)
    assert out.shape == (N, Cout, (L - ksize) // stride + 1), out.shape

    # Tight check vs a reference using the same bf16 MXU inputs.
    ref_bf16 = reference_forward(x, conv_w, bn_gamma, bn_beta, bn_mean, bn_var,
                                 stride=stride, eps=0.001,
                                 matmul_dtype=jnp.bfloat16)
    assert jnp.allclose(out, ref_bf16, atol=2e-3, rtol=2e-2), \
        float(jnp.max(jnp.abs(out - ref_bf16)))

    # Loose check vs exact f32 module math (difference = bf16 input rounding).
    ref_f32 = reference_forward(x, conv_w, bn_gamma, bn_beta, bn_mean, bn_var,
                                stride=stride, eps=0.001,
                                matmul_dtype=jnp.float32)
    assert jnp.allclose(out, ref_f32, atol=5e-2, rtol=5e-2), \
        float(jnp.max(jnp.abs(out - ref_f32)))

    print("KERNEL_OK")
</pallas_src>

<mosaic_0001>
module attributes {stable_mosaic.version = 11 : i64} {
  func.func @_conv1d_bn_relu_kernel(%arg0: i32, %arg1: memref<2x8x8xbf16, #tpu.memory_space<vmem>>, %arg2: memref<12x128xbf16, #tpu.memory_space<vmem>>, %arg3: memref<1x128xf32, #tpu.memory_space<vmem>>, %arg4: memref<1x128xf32, #tpu.memory_space<vmem>>, %arg5: memref<2x7x128xf32, #tpu.memory_space<vmem>>) attributes {dimension_semantics = [#tpu.dimension_semantics<parallel>], iteration_bounds = array<i64: 1>, scalar_prefetch = 0 : i64, scratch_operands = 0 : i64, tpu.core_type = #tpu.core_type<tc>, window_params = [{transform_indices = @transform_0, window_bounds = array<i64: 2, 8, 8>}, {pipeline_mode = #tpu.pipeline_mode<synchronous>, transform_indices = @transform_1, window_bounds = array<i64: 12, 128>}, {pipeline_mode = #tpu.pipeline_mode<synchronous>, transform_indices = @transform_2, window_bounds = array<i64: 1, 128>}, {pipeline_mode = #tpu.pipeline_mode<synchronous>, transform_indices = @transform_3, window_bounds = array<i64: 1, 128>}, {transform_indices = @transform_4, window_bounds = array<i64: 2, 7, 128>}]} {
    %c0 = arith.constant 0 : index
    %c0_0 = arith.constant 0 : index
    %c0_1 = arith.constant 0 : index
    %0 = vector.load %arg1[%c0, %c0_0, %c0_1] : memref<2x8x8xbf16, #tpu.memory_space<vmem>>, vector<2x8x8xbf16>
    %c0_2 = arith.constant 0 : index
    %c0_3 = arith.constant 0 : index
    %1 = vector.load %arg2[%c0_2, %c0_3] : memref<12x128xbf16, #tpu.memory_space<vmem>>, vector<12x128xbf16>
    %cst = arith.constant 0.000000e+00 : f32
    %2 = vector.broadcast %cst : f32 to vector<14x128xf32>
    %3 = vector.extract_strided_slice %0 {offsets = [0, 0, 0], sizes = [2, 7, 4], strides = [1, 1, 1]} : vector<2x8x8xbf16> to vector<2x7x4xbf16>
    %4 = vector.shape_cast %3 : vector<2x7x4xbf16> to vector<14x4xbf16>
    %5 = vector.extract_strided_slice %1 {offsets = [0, 0], sizes = [4, 128], strides = [1, 1]} : vector<12x128xbf16> to vector<4x128xbf16>
    %cst_4 = arith.constant dense<0.000000e+00> : vector<14x128xf32>
    %6 = tpu.matmul %4, %5, %cst_4 {dimension_numbers = #tpu.dot_dimension_numbers<[1], [0], [0], [1], [0, 0, 1, 1], [], []>} : vector<14x4xbf16>, vector<4x128xbf16>, vector<14x128xf32> -> vector<14x128xf32>
    %7 = arith.addf %2, %6 : vector<14x128xf32>
    %8 = vector.extract_strided_slice %0 {offsets = [0, 0, 4], sizes = [2, 7, 4], strides = [1, 1, 1]} : vector<2x8x8xbf16> to vector<2x7x4xbf16>
    %9 = vector.shape_cast %8 : vector<2x7x4xbf16> to vector<14x4xbf16>
    %10 = vector.extract_strided_slice %1 {offsets = [4, 0], sizes = [4, 128], strides = [1, 1]} : vector<12x128xbf16> to vector<4x128xbf16>
    %cst_5 = arith.constant dense<0.000000e+00> : vector<14x128xf32>
    %11 = tpu.matmul %9, %10, %cst_5 {dimension_numbers = #tpu.dot_dimension_numbers<[1], [0], [0], [1], [0, 0, 1, 1], [], []>} : vector<14x4xbf16>, vector<4x128xbf16>, vector<14x128xf32> -> vector<14x128xf32>
    %12 = arith.addf %7, %11 : vector<14x128xf32>
    %13 = vector.extract_strided_slice %0 {offsets = [0, 1, 0], sizes = [2, 7, 4], strides = [1, 1, 1]} : vector<2x8x8xbf16> to vector<2x7x4xbf16>
    %14 = vector.shape_cast %13 : vector<2x7x4xbf16> to vector<14x4xbf16>
    %15 = vector.extract_strided_slice %1 {offsets = [8, 0], sizes = [4, 128], strides = [1, 1]} : vector<12x128xbf16> to vector<4x128xbf16>
    %cst_6 = arith.constant dense<0.000000e+00> : vector<14x128xf32>
    %16 = tpu.matmul %14, %15, %cst_6 {dimension_numbers = #tpu.dot_dimension_numbers<[1], [0], [0], [1], [0, 0, 1, 1], [], []>} : vector<14x4xbf16>, vector<4x128xbf16>, vector<14x128xf32> -> vector<14x128xf32>
    %17 = arith.addf %12, %16 : vector<14x128xf32>
    %c0_7 = arith.constant 0 : index
    %c0_8 = arith.constant 0 : index
    %18 = vector.load %arg3[%c0_7, %c0_8] : memref<1x128xf32, #tpu.memory_space<vmem>>, vector<1x128xf32>
    %19 = vector.broadcast %18 : vector<1x128xf32> to vector<14x128xf32>
    %20 = arith.mulf %17, %19 : vector<14x128xf32>
    %c0_9 = arith.constant 0 : index
    %c0_10 = arith.constant 0 : index
    %21 = vector.load %arg4[%c0_9, %c0_10] : memref<1x128xf32, #tpu.memory_space<vmem>>, vector<1x128xf32>
    %22 = vector.broadcast %21 : vector<1x128xf32> to vector<14x128xf32>
    %23 = arith.addf %20, %22 : vector<14x128xf32>
    %cst_11 = arith.constant 0.000000e+00 : f32
    %24 = vector.broadcast %cst_11 : f32 to vector<14x128xf32>
    %25 = arith.maximumf %23, %24 : vector<14x128xf32>
    %26 = vector.shape_cast %25 : vector<14x128xf32> to vector<2x7x128xf32>
    %c0_12 = arith.constant 0 : index
    %c0_13 = arith.constant 0 : index
    %c0_14 = arith.constant 0 : index
    %27 = vector.load %arg5[%c0_12, %c0_13, %c0_14] : memref<2x7x128xf32, #tpu.memory_space<vmem>>, vector<2x7x128xf32>
    tpu.vector_store %arg5[%c0_12, %c0_13, %c0_14], %26 {strides = array<i32>} : memref<2x7x128xf32, #tpu.memory_space<vmem>>, vector<2x7x128xf32>,
    return
  }
  func.func @transform_0(%arg0: i32) -> (i32, i32, i32) {
    %c0_i32 = arith.constant 0 : i32
    %c0_i32_0 = arith.constant 0 : i32
    %c0_i32_1 = arith.constant 0 : i32
    return %arg0, %c0_i32, %c0_i32_0 : i32, i32, i32
  }
  func.func @transform_1(%arg0: i32) -> (i32, i32) {
    %c0_i32 = arith.constant 0 : i32
    %c0_i32_0 = arith.constant 0 : i32
    %c0_i32_1 = arith.constant 0 : i32
    return %c0_i32, %c0_i32_0 : i32, i32
  }
  func.func @transform_2(%arg0: i32) -> (i32, i32) {
    %c0_i32 = arith.constant 0 : i32
    %c0_i32_0 = arith.constant 0 : i32
    %c0_i32_1 = arith.constant 0 : i32
    return %c0_i32, %c0_i32_0 : i32, i32
  }
  func.func @transform_3(%arg0: i32) -> (i32, i32) {
    %c0_i32 = arith.constant 0 : i32
    %c0_i32_0 = arith.constant 0 : i32
    %c0_i32_1 = arith.constant 0 : i32
    return %c0_i32, %c0_i32_0 : i32, i32
  }
  func.func @transform_4(%arg0: i32) -> (i32, i32, i32) {
    %c0_i32 = arith.constant 0 : i32
    %c0_i32_0 = arith.constant 0 : i32
    %c0_i32_1 = arith.constant 0 : i32
    return %arg0, %c0_i32, %c0_i32_0 : i32, i32, i32
  }
}

</mosaic_0001>

<bundles_post_ra>
// kernel: tpu_custom_call.1
= control target key start
LH: loop header
LB: loop body
LE: loop exit
PB: predicated region body
PF: predicated region fallthrough
CT: control target
= control target key end

     0   :  { %9 = vsyncpa [#allocation3], 0  ;;  %s799_s0 = inlined_call_operand.hbm [shape: bf16[2,8,8], index: 0, kind: input, shape index: {}]   ;;  %s800_s1 = inlined_call_operand.hbm [shape: bf16[12,128], index: 1, kind: input, shape index: {}]   ;;  %s801_s2 = inlined_call_operand.vmem [shape: f32[1,128], index: 2, kind: input, shape index: {}]   ;;  %s802_s3 = inlined_call_operand.vmem [shape: f32[1,128], index: 3, kind: input, shape index: {}]   ;;  %s803_s4 = inlined_call_operand.vmem [shape: f32[2,7,128], index: 4, kind: output, shape index: {}]  }
   0x1   :  { %10 = vsyncpa [#allocation5], 0  ;;  %s694_s15 = smov [#allocation2]  }
   0x2   :  { %s16_s16 = sshll.u32 %s694_s15, 4  ;;  %s17_s16 = int_to_ptr.vmem [resolvable:$true] %s16_s16 }
   0x3   :  { %s658_s17 = scalar_lea.vmem %s17_s16, 128  ;;  %p663_p1 = scmp.lt.s32.totalorder %s17_s16, %s17_s16 }
   0x4   :  { %p659_p0 = scmp.ne.s32.totalorder %s17_s16, %s658_s17  ;;  %p664_p2 = scmp.lt.s32.totalorder %s658_s17, %s658_s17 }
   0x6   :  { %p665_p3 = por %p664_p2, %p663_p1 }
   0x8   :  { %p666_p4 = pnand %p665_p3, %p659_p0 }
   0xa   :  { %669 = shalt.err (!%p666_p4)
}
   0xb   :  { %s695_s18 = smov 64   ;;  %s696_s19 = smov 4  }
   0xc   :  { %22 = dma.hbm_to_vmem [thread:$0]  %s799_s0, 128, %s17_s16, [#allocation3], %s695_s18, %s695_s18, %s696_s19  }
   0xd   :  { %s697_s22 = smov [#allocation4]  }
   0xe   :  { %s28_s23 = sshll.u32 %s697_s22, 4  ;;  %s29_s23 = int_to_ptr.vmem [resolvable:$true] %s28_s23 }
   0xf   :  { %s678_s24 = scalar_lea.vmem %s29_s23, 128  ;;  %p683_p6 = scmp.lt.s32.totalorder %s29_s23, %s29_s23 }
  0x10   :  { %p679_p5 = scmp.ne.s32.totalorder %s29_s23, %s678_s24  ;;  %p684_p7 = scmp.lt.s32.totalorder %s678_s24, %s678_s24 }
  0x12   :  { %p685_p8 = por %p684_p7, %p683_p6 }
  0x14   :  { %p686_p9 = pnand %p685_p8, %p679_p5 }
  0x16   :  { %689 = shalt.err (!%p686_p9)
}
  0x17   :  { %34 = dma.hbm_to_vmem [thread:$0]  %s800_s1, 128, %s29_s23, [#allocation5], %s695_s18, %s695_s18, %s696_s19  }
  0x18   :  { %690 = dma.done.wait [#allocation3], 128  }
  0x19   :  { %691 = vsyncadd [#allocation3], 4294967168 }
  0x1a   :  { %692 = dma.done.wait [#allocation5], 128  }
  0x1b   :  { %693 = vsyncadd [#allocation5], 4294967168  ;;  %v63_v0 = vlaneseq  ;;  %v698_v1 = vmov 1966171168   ;;  %v699_v3 = vmov 0.0   ;;  %vm179_vm0 = vcmask 1041408  }
  0x1c   :  { %v61_v2 = vunpack.c.l.s4 %v698_v1  ;;  %623 = vmatprep.subr.bf16.mxu0 %v699_v3  ;;  %629 = vmatprep.subr.bf16.mxu1 %v699_v3  ;;  %v601_v7 = vld.sshfl [vmem:[#allocation2] sm:$0x33 pattern:$0x75316420]  ;;  %v48_v8 = vld [vmem:[#allocation4] sm:$0xf] }
  0x1d   :  { %v64_v4 = vshrl.u32 %v63_v0, 7  ;;  %v602_v9 = vld.sshfl [vmem:[#allocation2 + $0x4] sm:$0x33 pattern:$0x75316420]  ;;  %v59_v10 = vcombine.high %v601_v7, %v601_v7  ;;  %v607_v12 = vcombine.low %v48_v8, %v48_v8  ;;  %v228_v13 = vsel %vm179_vm0, %v48_v8, 0 }
  0x1e   :  { %v62_v5 = vunpack.c.0.s8 %v61_v2  ;;  %v83_v14 = vcombine.high %v602_v9, %v602_v9  ;;  %630 = vmatpush3.bf16.msra.mxu1 %v228_v13  ;;  %vm700_vm1 = vmmov 0   ;;  %vm175_vm2 = vcmask 31744   ;;  %s701_s0 = smov 124   ;;  %v49_v63 = vld [vmem:[#allocation4 + $0x4] sm:$0x3] }
  0x1f   :  { %v174_v22 = vrot.slane %v607_v12, 2  ;;  %625 = vmatprep.mubr.msk.bf16.mxu0 %vm700_vm1, %v699_v3  ;;  %631 = vmatprep.mubr.msk.bf16.mxu1 %vm700_vm1, %v699_v3  ;;  %v332_v0 = vsel %vm179_vm0, %v49_v63, 0 }
  0x20   :  { %v735_v6 = vsub.s32 %v62_v5, %v64_v4 }
  0x21   :  { %v181_v45 = vsel %vm179_vm0, %v174_v22, 0 }
  0x22   :  { %v66_v11 = vrot.slane %v601_v7, %v735_v6  ;;  %v90_v15 = vrot.slane %v602_v9, %v735_v6  ;;  %v73_v16 = vrot.slane %v59_v10, %v735_v6  ;;  %v97_v19 = vrot.slane %v83_v14, %v735_v6  ;;  %624 = vmatpush3.bf16.msra.mxu0 %v181_v45  ;;  %v614_v14 = vld [vmem:[%s801_s2] ss:$0 sm:$0xff] }
  0x23   :  { %635 = vmatprep.subr.bf16.mxu0 %v699_v3 }
  0x24   :  { %v74_v17 = vcombine.high %v66_v11, %v66_v11  ;;  %v101_v18 = vunpack.i.h.s16 %v66_v11  ;;  %v98_v20 = vcombine.high %v90_v15, %v90_v15  ;;  %v108_v21 = vunpack.i.h.s16 %v90_v15 }
  0x25   :  { %v75_v23 = vcombine.high %v73_v16, %v73_v16  ;;  %v103_v24 = vunpack.i.h.s16 %v73_v16  ;;  %v121_v26 = vcombine.low %v66_v11, %v73_v16  ;;  %v99_v27 = vcombine.high %v97_v19, %v97_v19 }
  0x26   :  { %v105_v25 = vunpack.i.h.s16 %v74_v17  ;;  %v110_v28 = vunpack.i.h.s16 %v97_v19  ;;  %v112_v29 = vunpack.i.h.s16 %v98_v20  ;;  %v604_v30 = vpack.i.b16 %v97_v19, %v108_v21 }
  0x27   :  { %v603_v31 = vpack.i.b16 %v90_v15, %v75_v23  ;;  %v130_v32 = vrot.slane %v121_v26, %v735_v6  ;;  %v271_v33 = vunpack.i.h.s16 %v75_v23  ;;  %v610_v34 = vpack.i.b16 %v73_v16, %v101_v18 }
  0x28   :  { %v605_v35 = vpack.i.b16 %v98_v20, %v110_v28  ;;  %v606_v36 = vpack.i.b16 %v99_v27, %v112_v29  ;;  %v611_v37 = vpack.i.b16 %v74_v17, %v103_v24  ;;  %v612_v38 = vpack.i.b16 %v75_v23, %v105_v25 }
  0x29   :  { %v122_v39 = vcombine.low %v74_v17, %v603_v31  ;;  %v276_v40 = vpack.i.b16 %v108_v21, %v271_v33  ;;  %v282_v41 = vcombine.low %v97_v19, %v98_v20  ;;  %v310_v42 = vrot.slane %v99_v27, %v735_v6 }
  0x2a   :  { %v123_v43 = vcombine.low %v604_v30, %v605_v35  ;;  %v151_v44 = vrot.slane %v606_v36, %v735_v6  ;;  %v280_v50 = vcombine.low %v610_v34, %v611_v37 }
  0x2b   :  { %v137_v46 = vrot.slane %v122_v39, %v735_v6  ;;  %v281_v47 = vcombine.low %v612_v38, %v276_v40  ;;  %v303_v48 = vrot.slane %v282_v41, %v735_v6 }
  0x2c   :  { %v144_v49 = vrot.slane %v123_v43, %v735_v6  ;;  %v289_v55 = vrot.slane %v280_v50, %v735_v6 }
  0x2d   :  { %v152_v51 = vcombine.low %v130_v32, %v137_v46  ;;  %v312_v52 = vcombine.low %v303_v48, %v310_v42  ;;  %v296_v53 = vrot.slane %v281_v47, %v735_v6 }
  0x2e   :  { %v153_v54 = vcombine.low %v144_v49, %v151_v44 }
  0x2f   :  { %v160_v56 = vrot.slane %v152_v51, %v735_v6  ;;  %v311_v58 = vcombine.low %v289_v55, %v296_v53  ;;  %v326_v59 = vrot.slane %v312_v52, %v735_v6 }
  0x30   :  { %v167_v57 = vrot.slane %v153_v54, %v735_v6 }
  0x31   :  { %v319_v61 = vrot.slane %v311_v58, %v735_v6 }
  0x32   :  { %v168_v60 = vcombine.low %v160_v56, %v167_v57 }
  0x33   :  { %v327_v62 = vcombine.low %v319_v61, %v326_v59 }
  0x34   :  { %169 = vrot.lane.b32.xlu0 %v168_v60, %s701_s0  ;;  %632 = vmatmul.mubr.msk.bf16.vlgmr.msra.gmra.mxu1 %vm175_vm2, %v168_v60 }
  0xa6   :  { %v170_v1 = vpop.permute.xlu0 %169 }
  0xa7   :  { %626 = vmatmul.mubr.msk.bf16.vlgmr.msra.gmra.mxu0 %vm175_vm2, %v170_v1 }
  0xa8   :  { %636 = vmatpush3.bf16.msra.mxu0 %v332_v0  ;;  %637 = vmatprep.mubr.msk.bf16.mxu0 %vm700_vm1, %v699_v3  ;;  %v615_v3 = vld [vmem:[%s802_s3] ss:$0 sm:$0xff] }
  0xaf   :  { %638 = vmatmul.mubr.msk.bf16.vlgmr.msra.gmra.mxu0 %vm175_vm2, %v327_v62 }
  0xf4   :  { %v264_v2 = vpop.f32.mrf.mxu1 }
  0xf6   :  { %v633_v4 = vpop.f32.mrf.mxu1 }
  0xf8   :  { %v267_v5 = vpop.f32.mrf.mxu1 }
  0xfa   :  { %v634_v7 = vpop.f32.mrf.mxu1 }
 0x167   :  { %v217_v8 = vpop.f32.mrf.mxu0 }
 0x168   :  { %v265_v12 = vadd.f32 %v264_v2, %v217_v8 }
 0x169   :  { %v627_v9 = vpop.f32.mrf.mxu0 }
 0x16b   :  { %v220_v10 = vpop.f32.mrf.mxu0 }
 0x16c   :  { %v268_v17 = vadd.f32 %v267_v5, %v220_v10 }
 0x16d   :  { %v628_v11 = vpop.f32.mrf.mxu0 }
 0x16f   :  { %v368_v13 = vpop.f32.mrf.mxu0 }
 0x170   :  { %v375_v15 = vadd.f32 %v368_v13, %v265_v12 }
 0x171   :  { %v639_v16 = vpop.f32.mrf.mxu0 }
 0x172   :  { %v384_v18 = vmul.f32 %v614_v14, %v375_v15 }
 0x173   :  { %v371_v19 = vpop.f32.mrf.mxu0 }
 0x174   :  { %v393_v20 = vadd.f32 %v615_v3, %v384_v18  ;;  %v376_v21 = vadd.f32 %v371_v19, %v268_v17 }
 0x175   :  { %v640_v22 = vpop.f32.mrf.mxu0 }
 0x176   :  { %v395_v23 = vmax.f32 %v393_v20, 0.0  ;;  %v385_v24 = vmul.f32 %v614_v14, %v376_v21 }
 0x178   :  { %v399_v25 = vcombine.high %v395_v23, %v395_v23  ;;  %v406_v26 = vrot.slane %v395_v23, %v735_v6  ;;  %v394_v27 = vadd.f32 %v615_v3, %v385_v24 }
 0x17a   :  { %v413_v28 = vrot.slane %v399_v25, %v735_v6  ;;  %v414_v29 = vcombine.high %v406_v26, %v406_v26  ;;  %v396_v30 = vmax.f32 %v394_v27, 0.0  ;;  %v422_v31 = vrot.slane %v406_v26, %v735_v6 }
 0x17c   :  { %v415_v32 = vcombine.high %v413_v28, %v413_v28  ;;  %v429_v33 = vrot.slane %v413_v28, %v735_v6  ;;  %v436_v34 = vrot.slane %v414_v29, %v735_v6  ;;  %v448_v35 = vcombine.high %v396_v30, %v396_v30 }
 0x17d   :  { %v455_v36 = vrot.slane %v396_v30, %v735_v6 }
 0x17e   :  { %v443_v37 = vrot.slane %v415_v32, %v735_v6  ;;  %v445_v38 = vcombine.high %v429_v33, %v429_v33  ;;  %v495_v39 = vcombine.low %v422_v31, %v436_v34  ;;  %v616_v40 = vcombine.high %v422_v31, %v436_v34 }
 0x17f   :  { %v462_v41 = vrot.slane %v448_v35, %v735_v6  ;;  %v463_v42 = vcombine.high %v455_v36, %v455_v36  ;;  %v471_v43 = vrot.slane %v455_v36, %v735_v6 }
 0x180   :  { %v497_v44 = vcombine.low %v429_v33, %v443_v37  ;;  %v504_v45 = vrot.slane %v495_v39, %v735_v6  ;;  %v511_v46 = vrot.slane %v616_v40, %v735_v6  ;;  %v447_v47 = vcombine.high %v443_v37, %v443_v37 }
 0x181   :  { %v464_v48 = vcombine.high %v462_v41, %v462_v41  ;;  %v485_v49 = vrot.slane %v463_v42, %v735_v6  ;;  %v525_v51 = vrot.slane %v445_v38, %v735_v6  ;;  %v493_v53 = vcombine.high %v471_v43, %v471_v43 }
 0x182   :  { %v518_v50 = vrot.slane %v497_v44, %v735_v6  ;;  %v526_v52 = vcombine.low %v504_v45, %v511_v46  ;;  %v478_v54 = vrot.slane %v462_v41, %v735_v6  ;;  %v543_v57 = vcombine.low %v447_v47, %v471_v43 }
 0x183   :  { %v492_v55 = vrot.slane %v464_v48, %v735_v6  ;;  %v494_v56 = vcombine.high %v485_v49, %v485_v49  ;;  %v544_v59 = vcombine.low %v485_v49, %v493_v53 }
 0x184   :  { %v527_v58 = vcombine.low %v518_v50, %v525_v51  ;;  %v552_v61 = vrot.slane %v543_v57, %v735_v6  ;;  %v534_v62 = vrot.slane %v526_v52, %v735_v6 }
 0x185   :  { %v545_v60 = vcombine.low %v494_v56, %v478_v54  ;;  %v559_v0 = vrot.slane %v544_v59, %v735_v6  ;;  %v573_v2 = vrot.slane %v492_v55, %v735_v6 }
 0x186   :  { %v541_v63 = vrot.slane %v527_v58, %v735_v6 }
 0x187   :  { %v566_v1 = vrot.slane %v545_v60, %v735_v6  ;;  %v574_v5 = vcombine.low %v552_v61, %v559_v0 }
 0x188   :  { %v542_v4 = vcombine.low %v534_v62, %v541_v63 }
 0x189   :  { %v575_v7 = vcombine.low %v566_v1, %v573_v2  ;;  %v582_v8 = vrot.slane %v574_v5, %v735_v6 }
 0x18a   :  { %593 = vst [vmem:[%s803_s4] sm:$0x7f] %v542_v4 }
 0x18b   :  { %v589_v9 = vrot.slane %v575_v7, %v735_v6 }
 0x18d   :  { %v590_v10 = vcombine.low %v582_v8, %v589_v9 }
 0x18f   :  { %594 = vst [vmem:[%s803_s4 + $0x8] sm:$0x7f] %v590_v10 }
 0x190   :  { %599 = vsyncpa [#allocation3], 1 }
 0x191   :  { %600 = vsyncpa [#allocation5], 1 }

</bundles_post_ra>
